<compile_context>
chip_gen: v5e
topology: v5e:2x2
jax: 0.10.0
libtpu: 0.0.40
codegen_flags: <defaults>
</compile_context>

<pallas_src>
import jax
import jax.numpy as jnp
from jax.experimental import pallas as pl
from jax.experimental.pallas import tpu as pltpu  # noqa: F401  (defaults already give whole-array VMEM blocks)

B = 2          # batch
N = 16         # num_nodes
S = 8          # seq_len
H = 32         # hidden_size
NV = 10        # nodevec embedding dim
EPS = 1e-5     # BatchNorm1d eps

# packed-parameter row offsets inside wvec (48, 32)
_ROW_WL = 0            # rows 0:32,  cols 0:8   -> linear.weight  (H, S)
_ROW_WF = H            # rows 32:40, cols 0:32  -> fc.weight      (S, H)
_ROW_BL = H + S        # row  40,    cols 0:32  -> linear.bias    (H,)
_ROW_BF = H + S + 1    # row  41,    cols 0:8   -> fc.bias        (S,)
_WVEC_ROWS = 48        # padded to a sublane multiple


# ---------------------------------------------------------------------------
# Single fused kernel: support -> graph conv -> linear/relu/fc -> batchnorm
# ---------------------------------------------------------------------------
def agcn_fused_kernel(nodevec_ref, x_ref, wvec_ref, gb_ref, o_ref):
    f32 = jnp.float32
    dn = (((1,), (1,)), ((), ()))          # contract axis 1 of lhs with axis 1 of rhs (A @ B.T)

    # ---- 1) adaptive adjacency + normalized self-loop Laplacian -------------
    v = nodevec_ref[...]                                                    # (N, NV)
    vvT = jax.lax.dot_general(v, v, dn, preferred_element_type=f32)         # (N, N), no explicit .T
    adp = jax.nn.sigmoid(jnp.maximum(vvT, 0.0))                             # symmetric
    ii = jax.lax.broadcasted_iota(jnp.int32, (N, N), 0)
    jj = jax.lax.broadcasted_iota(jnp.int32, (N, N), 1)
    m = adp + (ii == jj).astype(f32)                                        # adp + I, still symmetric
    # row_sum >= 1 always (sigmoid > 0 plus the self-loop) -> rsqrt is finite,
    # so the PyTorch isinf guard is dead code and omitted.
    d = jax.lax.rsqrt(jnp.sum(m, axis=1, keepdims=True))                    # (N, 1)
    # (M D^-1/2)^T D^-1/2 with M symmetric  ==  d_i * M_ij * d_j   (no m.T)
    support = d * m * jnp.transpose(d)                                      # (N, N)

    # ---- 2) graph conv: support @ x[b]  (two tiny MXU pushes, batch -> rows) -
    sx = jnp.concatenate(
        [jnp.dot(support, x_ref[b], preferred_element_type=f32) for b in range(B)],
        axis=0)                                                             # (B*N, S)

    # ---- 3) Linear(seq->hidden) + ReLU + Linear(hidden->seq), batch in M ----
    # weights stay in PyTorch (out, in) layout; dot_general contracts the in-dim.
    wl = wvec_ref[_ROW_WL:_ROW_WL + H, 0:S]                                 # (H, S)
    wf = wvec_ref[_ROW_WF:_ROW_WF + S, 0:H]                                 # (S, H)
    bl = wvec_ref[_ROW_BL:_ROW_BL + 1, 0:H]                                 # (1, H)
    bf = wvec_ref[_ROW_BF:_ROW_BF + 1, 0:S]                                 # (1, S)
    h = jax.lax.dot_general(sx, wl, dn, preferred_element_type=f32) + bl    # (B*N, H)
    h = jnp.maximum(h, 0.0)
    y = jax.lax.dot_general(h, wf, dn, preferred_element_type=f32) + bf     # (B*N, S)

    # ---- 4) BatchNorm1d over channels = num_nodes (training-mode stats) -----
    gamma = gb_ref[:, 0:1]                                                  # (N, 1)
    beta = gb_ref[:, 1:2]                                                   # (N, 1)
    inv_cnt = 1.0 / float(B * S)

    row_sum = jnp.sum(y, axis=1, keepdims=True)                             # (B*N, 1) one lane reduce
    acc = row_sum[0:N]
    for b in range(1, B):                                                   # sublane-aligned halves
        acc = acc + row_sum[b * N:(b + 1) * N]
    mean = acc * inv_cnt                                                    # (N, 1)

    mean_bn = jnp.concatenate([mean] * B, axis=0)                           # (B*N, 1)
    sq_sum = jnp.sum((y - mean_bn) ** 2, axis=1, keepdims=True)             # centered two-pass
    acc = sq_sum[0:N]
    for b in range(1, B):
        acc = acc + sq_sum[b * N:(b + 1) * N]
    var = acc * inv_cnt                                                     # (N, 1), biased

    scale = jax.lax.rsqrt(var + EPS) * gamma                                # (N, 1)
    shift = beta - mean * scale                                             # (N, 1)
    scale_bn = jnp.concatenate([scale] * B, axis=0)                         # (B*N, 1)
    shift_bn = jnp.concatenate([shift] * B, axis=0)

    o_ref[...] = y * scale_bn + shift_bn                                    # one flat (B*N, S) store


# ---------------------------------------------------------------------------
# One-time parameter packing (raw PyTorch layouts in, two padded buffers out).
# Do this at parameter-init time, NOT per forward.
# ---------------------------------------------------------------------------
def pack_params(wl, bl, wf, bf, gamma, beta):
    wvec = jnp.zeros((_WVEC_ROWS, H), dtype=jnp.float32)
    wvec = wvec.at[_ROW_WL:_ROW_WL + H, 0:S].set(wl.reshape(H, S).astype(jnp.float32))
    wvec = wvec.at[_ROW_WF:_ROW_WF + S, 0:H].set(wf.reshape(S, H).astype(jnp.float32))
    wvec = wvec.at[_ROW_BL, 0:H].set(bl.reshape(H).astype(jnp.float32))
    wvec = wvec.at[_ROW_BF, 0:S].set(bf.reshape(S).astype(jnp.float32))
    gb = jnp.stack([gamma.reshape(N).astype(jnp.float32),
                    beta.reshape(N).astype(jnp.float32)], axis=1)           # (N, 2)
    return wvec, gb


# ---------------------------------------------------------------------------
# Forward wrapper: one pallas_call, 4 input DMAs, flat output + free reshape.
# ---------------------------------------------------------------------------
def agcn_forward(x, nodevec, wvec, gb):
    out_flat = pl.pallas_call(
        agcn_fused_kernel,
        out_shape=jax.ShapeDtypeStruct((B * N, S), jnp.float32),
    )(nodevec, x, wvec, gb)
    return out_flat.reshape(B, N, S)                                        # contiguous reshape, free


# ---------------------------------------------------------------------------
# Pure-JAX reference (sanity check only; mirrors the PyTorch forward exactly)
# ---------------------------------------------------------------------------
def ref_forward(x, nodevec, wl, bl, wf, bf, gamma, beta):
    adp = jax.nn.sigmoid(jnp.maximum(nodevec @ nodevec.T, 0.0))
    m = adp + jnp.eye(N, dtype=jnp.float32)
    d = m.sum(1) ** -0.5
    dm = jnp.diag(d)
    sup = (m @ dm).T @ dm
    y = jnp.einsum('ij,bjk->bik', sup, x)
    y = jnp.maximum(jnp.einsum('bnk,hk->bnh', y, wl) + bl.reshape(1, 1, H), 0.0)
    y = jnp.einsum('bnh,sh->bns', y, wf) + bf.reshape(1, 1, S)
    mean = y.mean(axis=(0, 2), keepdims=True)
    var = ((y - mean) ** 2).mean(axis=(0, 2), keepdims=True)
    return ((y - mean) / jnp.sqrt(var + EPS) * gamma.reshape(1, N, 1)
            + beta.reshape(1, N, 1))


if __name__ == "__main__":
    key = jax.random.PRNGKey(0)
    k_x, k_v, k_wl, k_bl, k_wf, k_bf = jax.random.split(key, 6)

    # raw PyTorch-shaped parameters
    x = jax.random.normal(k_x, (B, N, S), dtype=jnp.float32)
    nodevec = jax.random.normal(k_v, (N, NV), dtype=jnp.float32)        # nn.Parameter(randn(N, 10))
    wl = jax.random.normal(k_wl, (H, S), dtype=jnp.float32) * 0.1       # linear.weight (out=H, in=S)
    bl = jax.random.normal(k_bl, (H,), dtype=jnp.float32) * 0.1         # linear.bias
    wf = jax.random.normal(k_wf, (S, H), dtype=jnp.float32) * 0.1       # fc.weight (out=S, in=H)
    bf = jax.random.normal(k_bf, (S,), dtype=jnp.float32) * 0.1         # fc.bias
    gamma = jnp.ones((N,), dtype=jnp.float32)                           # BatchNorm1d.weight
    beta = jnp.zeros((N,), dtype=jnp.float32)                           # BatchNorm1d.bias

    wvec, gb = pack_params(wl, bl, wf, bf, gamma, beta)                 # one-time packing

    out = jax.block_until_ready(agcn_forward(x, nodevec, wvec, gb))

    ref = ref_forward(x, nodevec, wl, bl, wf, bf, gamma, beta)
    assert out.shape == (B, N, S)
    err = float(jnp.max(jnp.abs(out - ref)))
    assert jnp.allclose(out, ref, rtol=2e-4, atol=2e-4), err

    print("KERNEL_OK")
</pallas_src>

<mosaic_0001>
module attributes {stable_mosaic.version = 11 : i64} {
  func.func @agcn_fused_kernel(%arg0: memref<16x10xf32, #tpu.memory_space<vmem>>, %arg1: memref<2x16x8xf32, #tpu.memory_space<vmem>>, %arg2: memref<48x32xf32, #tpu.memory_space<vmem>>, %arg3: memref<16x2xf32, #tpu.memory_space<vmem>>, %arg4: memref<32x8xf32, #tpu.memory_space<vmem>>) attributes {dimension_semantics = [], scalar_prefetch = 0 : i64, scratch_operands = 0 : i64, tpu.core_type = #tpu.core_type<tc>} {
    %c0 = arith.constant 0 : index
    %c0_0 = arith.constant 0 : index
    %0 = vector.load %arg0[%c0, %c0_0] : memref<16x10xf32, #tpu.memory_space<vmem>>, vector<16x10xf32>
    %cst = arith.constant dense<0.000000e+00> : vector<16x16xf32>
    %1 = tpu.matmul %0, %0, %cst {dimension_numbers = #tpu.dot_dimension_numbers<[1], [1], [0], [0], [0, 0, 1, 0], [], []>} : vector<16x10xf32>, vector<16x10xf32>, vector<16x16xf32> -> vector<16x16xf32>
    %cst_1 = arith.constant 0.000000e+00 : f32
    %2 = vector.broadcast %cst_1 : f32 to vector<16x16xf32>
    %3 = arith.maximumf %1, %2 : vector<16x16xf32>
    %4 = arith.negf %3 : vector<16x16xf32>
    %5 = math.exp %4 : vector<16x16xf32>
    %cst_2 = arith.constant 1.000000e+00 : f32
    %6 = vector.broadcast %cst_2 : f32 to vector<16x16xf32>
    %7 = arith.addf %6, %5 : vector<16x16xf32>
    %8 = arith.divf %6, %7 : vector<16x16xf32>
    %9 = tpu.iota {dimensions = array<i32: 0>} : vector<16x16xi32>
    %10 = tpu.iota {dimensions = array<i32: 1>} : vector<16x16xi32>
    %11 = arith.cmpi eq, %9, %10 : vector<16x16xi32>
    %12 = arith.extui %11 : vector<16x16xi1> to vector<16x16xi32>
    %13 = arith.sitofp %12 : vector<16x16xi32> to vector<16x16xf32>
    %14 = arith.addf %8, %13 : vector<16x16xf32>
    %cst_3 = arith.constant dense<0.000000e+00> : vector<16xf32>
    %15 = vector.multi_reduction <add>, %14, %cst_3 [1] : vector<16x16xf32> to vector<16xf32>
    %16 = vector.shape_cast %15 : vector<16xf32> to vector<16x1xf32>
    %17 = math.rsqrt %16 : vector<16x1xf32>
    %18 = vector.broadcast %17 : vector<16x1xf32> to vector<16x16xf32>
    %19 = arith.mulf %18, %14 : vector<16x16xf32>
    %20 = tpu.transpose %17, [1, 0] : vector<16x1xf32> -> vector<1x16xf32>
    %21 = vector.broadcast %20 : vector<1x16xf32> to vector<16x16xf32>
    %22 = arith.mulf %19, %21 : vector<16x16xf32>
    %c0_4 = arith.constant 0 : index
    %c0_5 = arith.constant 0 : index
    %c0_6 = arith.constant 0 : index
    %23 = vector.load %arg1[%c0_4, %c0_5, %c0_6] : memref<2x16x8xf32, #tpu.memory_space<vmem>>, vector<1x16x8xf32>
    %24 = vector.shape_cast %23 : vector<1x16x8xf32> to vector<16x8xf32>
    %cst_7 = arith.constant dense<0.000000e+00> : vector<16x8xf32>
    %25 = tpu.matmul %22, %24, %cst_7 {dimension_numbers = #tpu.dot_dimension_numbers<[1], [0], [0], [1], [0, 0, 1, 1], [], []>} : vector<16x16xf32>, vector<16x8xf32>, vector<16x8xf32> -> vector<16x8xf32>
    %c1 = arith.constant 1 : index
    %c0_8 = arith.constant 0 : index
    %c0_9 = arith.constant 0 : index
    %26 = vector.load %arg1[%c1, %c0_8, %c0_9] : memref<2x16x8xf32, #tpu.memory_space<vmem>>, vector<1x16x8xf32>
    %27 = vector.shape_cast %26 : vector<1x16x8xf32> to vector<16x8xf32>
    %cst_10 = arith.constant dense<0.000000e+00> : vector<16x8xf32>
    %28 = tpu.matmul %22, %27, %cst_10 {dimension_numbers = #tpu.dot_dimension_numbers<[1], [0], [0], [1], [0, 0, 1, 1], [], []>} : vector<16x16xf32>, vector<16x8xf32>, vector<16x8xf32> -> vector<16x8xf32>
    %29 = tpu.concatenate %25, %28 in 0 : vector<16x8xf32>, vector<16x8xf32> -> vector<32x8xf32>
    %c0_11 = arith.constant 0 : index
    %c0_12 = arith.constant 0 : index
    %30 = vector.load %arg2[%c0_11, %c0_12] : memref<48x32xf32, #tpu.memory_space<vmem>>, vector<32x8xf32>
    %c32 = arith.constant 32 : index
    %c0_13 = arith.constant 0 : index
    %31 = vector.load %arg2[%c32, %c0_13] : memref<48x32xf32, #tpu.memory_space<vmem>>, vector<8x32xf32>
    %c40 = arith.constant 40 : index
    %c0_14 = arith.constant 0 : index
    %32 = vector.load %arg2[%c40, %c0_14] : memref<48x32xf32, #tpu.memory_space<vmem>>, vector<1x32xf32>
    %c41 = arith.constant 41 : index
    %c0_15 = arith.constant 0 : index
    %33 = vector.load %arg2[%c41, %c0_15] : memref<48x32xf32, #tpu.memory_space<vmem>>, vector<1x8xf32>
    %cst_16 = arith.constant dense<0.000000e+00> : vector<32x32xf32>
    %34 = tpu.matmul %29, %30, %cst_16 {dimension_numbers = #tpu.dot_dimension_numbers<[1], [1], [0], [0], [0, 0, 1, 0], [], []>} : vector<32x8xf32>, vector<32x8xf32>, vector<32x32xf32> -> vector<32x32xf32>
    %35 = vector.broadcast %32 : vector<1x32xf32> to vector<32x32xf32>
    %36 = arith.addf %34, %35 : vector<32x32xf32>
    %cst_17 = arith.constant 0.000000e+00 : f32
    %37 = vector.broadcast %cst_17 : f32 to vector<32x32xf32>
    %38 = arith.maximumf %36, %37 : vector<32x32xf32>
    %cst_18 = arith.constant dense<0.000000e+00> : vector<32x8xf32>
    %39 = tpu.matmul %38, %31, %cst_18 {dimension_numbers = #tpu.dot_dimension_numbers<[1], [1], [0], [0], [0, 0, 1, 0], [], []>} : vector<32x32xf32>, vector<8x32xf32>, vector<32x8xf32> -> vector<32x8xf32>
    %40 = vector.broadcast %33 : vector<1x8xf32> to vector<32x8xf32>
    %41 = arith.addf %39, %40 : vector<32x8xf32>
    %c0_19 = arith.constant 0 : index
    %c0_20 = arith.constant 0 : index
    %42 = vector.load %arg3[%c0_19, %c0_20] : memref<16x2xf32, #tpu.memory_space<vmem>>, vector<16x1xf32>
    %c0_21 = arith.constant 0 : index
    %c1_22 = arith.constant 1 : index
    %43 = vector.load %arg3[%c0_21, %c1_22] : memref<16x2xf32, #tpu.memory_space<vmem>>, vector<16x1xf32>
    %cst_23 = arith.constant dense<0.000000e+00> : vector<32xf32>
    %44 = vector.multi_reduction <add>, %41, %cst_23 [1] : vector<32x8xf32> to vector<32xf32>
    %45 = vector.shape_cast %44 : vector<32xf32> to vector<32x1xf32>
    %46 = vector.extract_strided_slice %45 {offsets = [0, 0], sizes = [16, 1], strides = [1, 1]} : vector<32x1xf32> to vector<16x1xf32>
    %47 = vector.extract_strided_slice %45 {offsets = [16, 0], sizes = [16, 1], strides = [1, 1]} : vector<32x1xf32> to vector<16x1xf32>
    %48 = arith.addf %46, %47 : vector<16x1xf32>
    %cst_24 = arith.constant 6.250000e-02 : f32
    %49 = vector.broadcast %cst_24 : f32 to vector<16x1xf32>
    %50 = arith.mulf %48, %49 : vector<16x1xf32>
    %51 = tpu.concatenate %50, %50 in 0 : vector<16x1xf32>, vector<16x1xf32> -> vector<32x1xf32>
    %52 = vector.broadcast %51 : vector<32x1xf32> to vector<32x8xf32>
    %53 = arith.subf %41, %52 : vector<32x8xf32>
    %54 = arith.mulf %53, %53 : vector<32x8xf32>
    %cst_25 = arith.constant dense<0.000000e+00> : vector<32xf32>
    %55 = vector.multi_reduction <add>, %54, %cst_25 [1] : vector<32x8xf32> to vector<32xf32>
    %56 = vector.shape_cast %55 : vector<32xf32> to vector<32x1xf32>
    %57 = vector.extract_strided_slice %56 {offsets = [0, 0], sizes = [16, 1], strides = [1, 1]} : vector<32x1xf32> to vector<16x1xf32>
    %58 = vector.extract_strided_slice %56 {offsets = [16, 0], sizes = [16, 1], strides = [1, 1]} : vector<32x1xf32> to vector<16x1xf32>
    %59 = arith.addf %57, %58 : vector<16x1xf32>
    %cst_26 = arith.constant 6.250000e-02 : f32
    %60 = vector.broadcast %cst_26 : f32 to vector<16x1xf32>
    %61 = arith.mulf %59, %60 : vector<16x1xf32>
    %cst_27 = arith.constant 9.99999974E-6 : f32
    %62 = vector.broadcast %cst_27 : f32 to vector<16x1xf32>
    %63 = arith.addf %61, %62 : vector<16x1xf32>
    %64 = math.rsqrt %63 : vector<16x1xf32>
    %65 = arith.mulf %64, %42 : vector<16x1xf32>
    %66 = arith.mulf %50, %65 : vector<16x1xf32>
    %67 = arith.subf %43, %66 : vector<16x1xf32>
    %68 = tpu.concatenate %65, %65 in 0 : vector<16x1xf32>, vector<16x1xf32> -> vector<32x1xf32>
    %69 = tpu.concatenate %67, %67 in 0 : vector<16x1xf32>, vector<16x1xf32> -> vector<32x1xf32>
    %70 = vector.broadcast %68 : vector<32x1xf32> to vector<32x8xf32>
    %71 = arith.mulf %41, %70 : vector<32x8xf32>
    %72 = vector.broadcast %69 : vector<32x1xf32> to vector<32x8xf32>
    %73 = arith.addf %71, %72 : vector<32x8xf32>
    %c0_28 = arith.constant 0 : index
    %c0_29 = arith.constant 0 : index
    %74 = vector.load %arg4[%c0_28, %c0_29] : memref<32x8xf32, #tpu.memory_space<vmem>>, vector<32x8xf32>
    tpu.vector_store %arg4[%c0_28, %c0_29], %73 {strides = array<i32>} : memref<32x8xf32, #tpu.memory_space<vmem>>, vector<32x8xf32>,
    return
  }
}

</mosaic_0001>

<bundles_post_ra>
// kernel: tpu_custom_call.1
= control target key start
LH: loop header
LB: loop body
LE: loop exit
PB: predicated region body
PF: predicated region fallthrough
CT: control target
= control target key end

     0   :  { %vm19_vm0 = vcmask 80896   ;;  %v89_v10 = vlaneseq  ;;  %v517_v24 = vmov 0.0   ;;  %vm102_vm6 = vcmask 130048   ;;  %s519_s14 = smov 1   ;;  %s658_s0 = inlined_call_operand.vmem [shape: f32[16,10], index: 0, kind: input, shape index: {}]   ;;  %s659_s2 = inlined_call_operand.vmem [shape: f32[48,32], index: 2, kind: input, shape index: {}]   ;;  %s660_s1 = inlined_call_operand.vmem [shape: f32[2,16,8], index: 1, kind: input, shape index: {}]   ;;  %s661_s3 = inlined_call_operand.vmem [shape: f32[16,2], index: 3, kind: input, shape index: {}]   ;;  %s662_s4 = inlined_call_operand.vmem [shape: f32[32,8], index: 4, kind: output, shape index: {}]  }
   0x1   :  { %v18_v0 = vld [vmem:[%s658_s0 + $0x8] sm:$0xff]  ;;  %v17_v1 = vld [vmem:[%s658_s0] sm:$0xff]  ;;  %v470_v61 = vld [vmem:[%s660_s1 + $0x18] sm:$0xff] }
   0x2   :  { %459 = vmatpush.xpose.msk.msra.mxu0 %vm19_vm0, %v18_v0  ;;  %v90_v14 = vshrl.u32 %v89_v10, 7  ;;  %v93_v15 = vand.u32 127, %v89_v10  ;;  %v167_v59 = vld [vmem:[%s660_s1 + $0x8] sm:$0xff]  ;;  %v166_v60 = vld [vmem:[%s660_s1] sm:$0xff]  ;;  %v469_v62 = vld [vmem:[%s660_s1 + $0x10] sm:$0xff] }
   0x3   :  { %188 = vmatpush.msra.mxu2 %v167_v59  ;;  %v226_v63 = vld [vmem:[%s659_s2 + $0x18] sm:$0xff] }
   0x4   :  { %vm94_vm1 = vcmp.eq.s32.totalorder %v90_v14, %v93_v15  ;;  %v91_v26 = vadd.s32 8, %v90_v14  ;;  %v499_v14 = vld [vmem:[%s659_s2 + $0x28] ss:$0 sm:$0xff] }
   0x5   :  { %v465_v25 = vsel %vm94_vm1, 1.0, %v517_v24  ;;  %189 = vmatpush.msra.mxu2 %v166_v60 }
   0x6   :  { %460 = vmatpush.xpose.msk.msra.mxu0 %vm19_vm0, %v17_v1  ;;  %vm95_vm7 = vcmp.eq.s32.totalorder %v91_v26, %v93_v15 }
   0x7   :  { %v466_v38 = vsel %vm95_vm7, 1.0, %v517_v24  ;;  %214 = vmatpush.msrb.mxu2 %v470_v61 }
   0x9   :  { %461 = vmatmul.msk.f32.vlgmr.msra.gmra.mxu0 %vm19_vm0, %v17_v1  ;;  %215 = vmatpush.msrb.mxu2 %v469_v62 }
  0x11   :  { %462 = vmatmul.msk.f32.gmra.mxu0 %vm19_vm0, %v18_v0  ;;  %v225_v0 = vld [vmem:[%s659_s2 + $0x10] sm:$0xff] }
  0x86   :  { %v43_v2 = vpop.f32.mrf.mxu0 }
  0x87   :  { %v49_v3 = vmax.f32 %v43_v2, 0.0 }
  0x89   :  { %v463_v4 = vmul.f32 -1.442695, %v49_v3 }
  0x8b   :  { %501 = vpow2.f32 %v463_v4 }
  0x8e   :  { %v46_v5 = vpop.f32.mrf.mxu0 }
  0x8f   :  { %v50_v6 = vmax.f32 %v46_v5, 0.0  ;;  %v224_v5 = vld [vmem:[%s659_s2 + $0x8] sm:$0xff] }
  0x91   :  { %v502_v7 = vpop.eup %501  ;;  %v464_v8 = vmul.f32 -1.442695, %v50_v6  ;;  %v223_v6 = vld [vmem:[%s659_s2] sm:$0xff] }
  0x92   :  { %v57_v9 = vadd.f32 1.0, %v502_v7 }
  0x93   :  { %503 = vpow2.f32 %v464_v8 }
  0x94   :  { %505 = vrcp.f32 %v57_v9  ;;  %v70_v18 = vand.u32 2147483648, %v57_v9  ;;  %v68_v20 = vand.u32 2147483647, %v57_v9  ;;  %vm64_vm3 = vweird.f32 %v57_v9 }
  0x96   :  { %v71_v23 = vor.u32 1.1754944e-38, %v70_v18  ;;  %vm69_vm5 = vcmp.eq.f32.partialorder %v68_v20, 8.507059e+37 }
  0x99   :  { %v504_v11 = vpop.eup %503 }
  0x9a   :  { %v506_v12 = vpop.eup %505  ;;  %v58_v13 = vadd.f32 1.0, %v504_v11 }
  0x9b   :  { %v60_v16 = vmul.f32 %v506_v12, %v57_v9  ;;  %vm65_vm2 = vweird.f32 %v506_v12 }
  0x9c   :  { %507 = vrcp.f32 %v58_v13  ;;  %vm66_vm4 = vmor %vm64_vm3, %vm65_vm2  ;;  %v85_v32 = vand.u32 2147483648, %v58_v13  ;;  %v83_v35 = vand.u32 2147483647, %v58_v13  ;;  %vm79_vm9 = vweird.f32 %v58_v13 }
  0x9d   :  { %v61_v17 = vsub.f32 1.0, %v60_v16  ;;  %vm231_vm2 = vcmask 64512   ;;  %vm290_vm3 = vcmask 261120  }
  0x9e   :  { %v86_v37 = vor.u32 1.1754944e-38, %v85_v32  ;;  %vm84_vm11 = vcmp.eq.f32.partialorder %v83_v35, 8.507059e+37  ;;  %473 = vmatpush.xpose.msk.msrb.mxu0 %vm231_vm2, %v226_v63  ;;  %486 = vmatpush.xpose.msk.msra.mxu3 %vm231_vm2, %v226_v63 }
  0x9f   :  { %v62_v19 = vmul.f32 %v506_v12, %v61_v17 }
  0xa1   :  { %v63_v21 = vadd.f32 %v506_v12, %v62_v19 }
  0xa2   :  { %v508_v22 = vpop.eup %507  ;;  %474 = vmatpush.xpose.msk.msrb.mxu0 %vm231_vm2, %v225_v0  ;;  %487 = vmatpush.xpose.msk.msra.mxu3 %vm231_vm2, %v225_v0 }
  0xa3   :  { %v67_v27 = vsel %vm66_vm4, %v506_v12, %v63_v21  ;;  %v75_v28 = vmul.f32 %v508_v22, %v58_v13  ;;  %vm80_vm8 = vweird.f32 %v508_v22  ;;  %v227_v13 = vld [vmem:[%s659_s2 + $0x20] sm:$0xff] }
  0xa4   :  { %v72_v29 = vsel %vm69_vm5, %v71_v23, %v67_v27  ;;  %vm81_vm10 = vmor %vm79_vm9, %vm80_vm8  ;;  %481 = vmatpush.xpose.msk.msra.mxu1 %vm290_vm3, %v227_v13  ;;  %v500_v27 = vld [vmem:[%s659_s2 + $0x29] ss:$0 sm:$0xff] }
  0xa5   :  { %v100_v30 = vadd.f32 %v465_v25, %v72_v29  ;;  %v76_v31 = vsub.f32 1.0, %v75_v28 }
  0xa6   :  { %475 = vmatpush.xpose.msk.msrb.mxu0 %vm231_vm2, %v224_v5  ;;  %488 = vmatpush.xpose.msk.msra.mxu3 %vm231_vm2, %v224_v5 }
  0xa7   :  { %v103_v33 = vsel %vm102_vm6, %v100_v30, 0.0  ;;  %v77_v34 = vmul.f32 %v508_v22, %v76_v31 }
  0xa8   :  { %104 = vadd.xlane.f32.xlu0 %v103_v33 }
  0xa9   :  { %v78_v36 = vadd.f32 %v508_v22, %v77_v34 }
  0xaa   :  { %476 = vmatpush.xpose.msk.msrb.mxu0 %vm231_vm2, %v223_v6  ;;  %489 = vmatpush.xpose.msk.msra.mxu3 %vm231_vm2, %v223_v6 }
  0xab   :  { %v82_v39 = vsel %vm81_vm10, %v508_v22, %v78_v36 }
  0xac   :  { %v87_v40 = vsel %vm84_vm11, %v86_v37, %v82_v39 }
  0xad   :  { %v101_v41 = vadd.f32 %v466_v38, %v87_v40  ;;  %v518_v40 = vmov 0  }
  0xae   :  { %494 = vset.pattern.permute.xlu2 %v518_v40  ;;  %495 = vset.pattern.permute.xlu0 %v518_v40 }
  0xaf   :  { %v106_v42 = vsel %vm102_vm6, %v101_v41, 0.0 }
  0xb0   :  { %107 = vadd.xlane.f32.xlu0 %v106_v42 }
 0x11b   :  { %v105_v43 = vpop.xlane.xlu0 %104 }
 0x11c   :  { %509 = vrsqrt.f32 %v105_v43  ;;  %vm115_vm13 = vweird.f32 %v105_v43 }
 0x122   :  { %v510_v44 = vpop.eup %509 }
 0x123   :  { %v110_v45 = vmul.f32 %v510_v44, %v105_v43  ;;  %v108_v46 = vpop.xlane.xlu0 %107  ;;  %vm116_vm12 = vweird.f32 %v510_v44 }
 0x124   :  { %511 = vrsqrt.f32 %v108_v46  ;;  %vm117_vm14 = vmor %vm115_vm13, %vm116_vm12  ;;  %vm125_vm0 = vweird.f32 %v108_v46 }
 0x125   :  { %v111_v47 = vmul.f32 %v510_v44, %v110_v45 }
 0x127   :  { %v112_v48 = vmul.f32 0.5, %v111_v47 }
 0x129   :  { %v113_v49 = vsub.f32 1.5, %v112_v48 }
 0x12a   :  { %v512_v50 = vpop.eup %511 }
 0x12b   :  { %v120_v51 = vmul.f32 %v512_v50, %v108_v46  ;;  %v114_v52 = vmul.f32 %v510_v44, %v113_v49  ;;  %vm126_vm15 = vweird.f32 %v512_v50 }
 0x12c   :  { %vm127_vm1 = vmor %vm125_vm0, %vm126_vm15 }
 0x12d   :  { %v121_v53 = vmul.f32 %v512_v50, %v120_v51  ;;  %v118_v54 = vsel %vm117_vm14, %v510_v44, %v114_v52 }
 0x12e   :  { %131 = vxpose.xlu1.b32.start [1/2] (short) (narrow) %v118_v54, 8  ;;  %v129_v2 = vmul.f32 %v118_v54, %v100_v30 }
 0x12f   :  { %v122_v55 = vmul.f32 0.5, %v121_v53 }
 0x131   :  { %v123_v56 = vsub.f32 1.5, %v122_v55 }
 0x133   :  { %v124_v57 = vmul.f32 %v512_v50, %v123_v56 }
 0x135   :  { %v128_v58 = vsel %vm127_vm1, %v512_v50, %v124_v57 }
 0x136   :  { %132 = vxpose.xlu1.b32.end [2/2] (short) (narrow) %v128_v58, 8  ;;  %v130_v7 = vmul.f32 %v128_v58, %v101_v41 }
 0x189   :  { %496 = vset.pattern.permute.xlu1 %v518_v40 }
 0x1d2   :  { %v147_v1 = vpop.trf.xlu1 }
 0x1d3   :  { %v163_v3 = vperm.slane %v147_v1, 0 }
 0x1d5   :  { %v164_v4 = vmul.f32 %v163_v3, %v129_v2  ;;  %v165_v8 = vmul.f32 %v163_v3, %v130_v7 }
 0x1d7   :  { %467 = vmatmul.msk.f32.vlgmr.msra.gmra.mxu2 %vm102_vm6, %v164_v4 }
 0x1df   :  { %468 = vmatmul.msk.f32.gmra.mxu2 %vm102_vm6, %v165_v8 }
 0x1e7   :  { %471 = vmatmul.msk.f32.vlgmr.msrb.gmra.mxu2 %vm102_vm6, %v164_v4 }
 0x1ef   :  { %472 = vmatmul.msk.f32.gmra.mxu2 %vm102_vm6, %v165_v8 }
 0x25a   :  { %v191_v9 = vpop.f32.mrf.mxu2 }
 0x25b   :  { %477 = vmatmul.msk.f32.vlgmr.msrb.gmra.mxu0 %vm231_vm2, %v191_v9  ;;  %v335_v9 = vld [vmem:[%s661_s3] sm:$0xff] }
 0x262   :  { %v194_v10 = vpop.f32.mrf.mxu2 }
 0x263   :  { %478 = vmatmul.msk.f32.vlgmr.msra.gmra.mxu3 %vm231_vm2, %v194_v10 }
 0x26a   :  { %v217_v11 = vpop.f32.mrf.mxu2 }
 0x26b   :  { %479 = vmatmul.msk.f32.gmra.mxu3 %vm231_vm2, %v217_v11 }
 0x272   :  { %v220_v12 = vpop.f32.mrf.mxu2 }
 0x273   :  { %480 = vmatmul.msk.f32.gmra.mxu3 %vm231_vm2, %v220_v12 }
 0x2d8   :  { %v273_v15 = vpop.f32.mrf.mxu0 }
 0x2d9   :  { %v274_v16 = vadd.f32 %v499_v14, %v273_v15 }
 0x2db   :  { %v285_v17 = vmax.f32 %v274_v16, 0.0 }
 0x2dd   :  { %482 = vmatmul.msk.f32.vlgmr.msra.gmra.mxu1 %vm290_vm3, %v285_v17 }
 0x2e6   :  { %v276_v18 = vpop.f32.mrf.mxu3 }
 0x2e7   :  { %v277_v19 = vadd.f32 %v499_v14, %v276_v18 }
 0x2e9   :  { %v286_v20 = vmax.f32 %v277_v19, 0.0 }
 0x2eb   :  { %483 = vmatmul.msk.f32.gmra.mxu1 %vm290_vm3, %v286_v20 }
 0x2ee   :  { %v279_v21 = vpop.f32.mrf.mxu3 }
 0x2ef   :  { %v280_v22 = vadd.f32 %v499_v14, %v279_v21 }
 0x2f1   :  { %v287_v23 = vmax.f32 %v280_v22, 0.0 }
 0x2f3   :  { %484 = vmatmul.msk.f32.gmra.mxu1 %vm290_vm3, %v287_v23 }
 0x2f6   :  { %v282_v24 = vpop.f32.mrf.mxu3 }
 0x2f7   :  { %v283_v25 = vadd.f32 %v499_v14, %v282_v24  ;;  %v336_v24 = vld [vmem:[%s661_s3 + $0x8] sm:$0xff] }
 0x2f9   :  { %v288_v26 = vmax.f32 %v283_v25, 0.0 }
 0x2fb   :  { %485 = vmatmul.msk.f32.gmra.mxu1 %vm290_vm3, %v288_v26 }
 0x35a   :  { %v323_v28 = vpop.f32.mrf.mxu1 }
 0x35b   :  { %v608_v29 = vadd.f32 %v500_v27, %v323_v28 }
 0x35d   :  { %v337_v30 = vsel %vm231_vm2, %v608_v29, 0.0 }
 0x35e   :  { %338 = vadd.xlane.f32.xlu2 %v337_v30  ;;  %v520_v30 = vmov 1  }
 0x368   :  { %v326_v31 = vpop.f32.mrf.mxu1 }
 0x369   :  { %v612_v32 = vadd.f32 %v500_v27, %v326_v31 }
 0x36b   :  { %v340_v33 = vsel %vm231_vm2, %v612_v32, 0.0 }
 0x36c   :  { %341 = vadd.xlane.f32.xlu2 %v340_v33 }
 0x370   :  { %v329_v34 = vpop.f32.mrf.mxu1 }
 0x371   :  { %v616_v35 = vadd.f32 %v500_v27, %v329_v34 }
 0x373   :  { %v343_v36 = vsel %vm231_vm2, %v616_v35, 0.0 }
 0x374   :  { %344 = vadd.xlane.f32.xlu0 %v343_v36 }
 0x378   :  { %v332_v37 = vpop.f32.mrf.mxu1 }
 0x379   :  { %v620_v38 = vadd.f32 %v500_v27, %v332_v37 }
 0x37b   :  { %v346_v39 = vsel %vm231_vm2, %v620_v38, 0.0 }
 0x37c   :  { %347 = vadd.xlane.f32.xlu1 %v346_v39 }
 0x3d1   :  { %v339_v41 = vpop.xlane.xlu2 %338 }
 0x3df   :  { %v342_v45 = vpop.xlane.xlu2 %341 }
 0x3e7   :  { %v345_v42 = vpop.xlane.xlu0 %344 }
 0x3e8   :  { %v349_v43 = vadd.f32 %v345_v42, %v339_v41 }
 0x3ea   :  { %v351_v44 = vmul.f32 0.0625, %v349_v43 }
 0x3ec   :  { %355 = vperm.xlu2 %494, %v351_v44  }
 0x3ef   :  { %v348_v46 = vpop.xlane.xlu1 %347 }
 0x3f0   :  { %v350_v47 = vadd.f32 %v348_v46, %v342_v45 }
 0x3f2   :  { %v352_v48 = vmul.f32 0.0625, %v350_v47 }
 0x3f4   :  { %360 = vperm.xlu0 %495, %v352_v48  }
 0x3fc   :  { %497 = vset.pattern.permute.xlu0 %v520_v30 }
 0x446   :  { %v356_v49 = vpop.permute.xlu2 %355 }
 0x447   :  { %v363_v50 = vsub.f32 %v608_v29, %v356_v49  ;;  %v365_v52 = vsub.f32 %v616_v35, %v356_v49 }
 0x449   :  { %v367_v51 = vmul.f32 %v363_v50, %v363_v50  ;;  %v369_v54 = vmul.f32 %v365_v52, %v365_v52 }
 0x44b   :  { %v371_v53 = vsel %vm231_vm2, %v367_v51, 0.0  ;;  %v377_v55 = vsel %vm231_vm2, %v369_v54, 0.0 }
 0x44c   :  { %372 = vadd.xlane.f32.xlu2 %v371_v53 }
 0x454   :  { %378 = vadd.xlane.f32.xlu2 %v377_v55 }
 0x466   :  { %v361_v56 = vpop.permute.xlu0 %360 }
 0x467   :  { %v364_v57 = vsub.f32 %v612_v32, %v361_v56  ;;  %v366_v58 = vsub.f32 %v620_v38, %v361_v56 }
 0x469   :  { %v368_v59 = vmul.f32 %v364_v57, %v364_v57  ;;  %v370_v60 = vmul.f32 %v366_v58, %v366_v58 }
 0x46b   :  { %v380_v61 = vsel %vm231_vm2, %v370_v60, 0.0  ;;  %v374_v62 = vsel %vm231_vm2, %v368_v59, 0.0 }
 0x46c   :  { %381 = vadd.xlane.f32.xlu2 %v380_v61  ;;  %375 = vadd.xlane.f32.xlu0 %v374_v62 }
 0x4bf   :  { %v373_v63 = vpop.xlane.xlu2 %372 }
 0x4c7   :  { %v379_v0 = vpop.xlane.xlu2 %378 }
 0x4c8   :  { %v383_v1 = vadd.f32 %v379_v0, %v373_v63 }
 0x4ca   :  { %v385_v2 = vmul.f32 0.0625, %v383_v1 }
 0x4cc   :  { %v387_v3 = vadd.f32 1e-05, %v385_v2 }
 0x4ce   :  { %513 = vrsqrt.f32 %v387_v3  ;;  %vm395_vm5 = vweird.f32 %v387_v3 }
 0x4d4   :  { %v514_v4 = vpop.eup %513 }
 0x4d5   :  { %v390_v5 = vmul.f32 %v514_v4, %v387_v3  ;;  %vm396_vm4 = vweird.f32 %v514_v4 }
 0x4d6   :  { %vm397_vm6 = vmor %vm395_vm5, %vm396_vm4 }
 0x4d7   :  { %v391_v6 = vmul.f32 %v514_v4, %v390_v5 }
 0x4d9   :  { %v392_v7 = vmul.f32 0.5, %v391_v6 }
 0x4db   :  { %v393_v8 = vsub.f32 1.5, %v392_v7 }
 0x4dd   :  { %v394_v10 = vmul.f32 %v514_v4, %v393_v8 }
 0x4df   :  { %v382_v11 = vpop.xlane.xlu2 %381  ;;  %v376_v12 = vpop.xlane.xlu0 %375  ;;  %v398_v13 = vsel %vm397_vm6, %v514_v4, %v394_v10 }
 0x4e0   :  { %v384_v14 = vadd.f32 %v382_v11, %v376_v12  ;;  %v409_v15 = vmul.f32 %v398_v13, %v335_v9 }
 0x4e2   :  { %v386_v16 = vmul.f32 0.0625, %v384_v14  ;;  %425 = vperm.xlu1 %496, %v409_v15   ;;  %v411_v17 = vmul.f32 %v409_v15, %v351_v44 }
 0x4e4   :  { %v388_v18 = vadd.f32 1e-05, %v386_v16  ;;  %415 = vrot.lane.b32.xlu2 %v411_v17, %s519_s14 }
 0x4e6   :  { %515 = vrsqrt.f32 %v388_v18  ;;  %vm405_vm8 = vweird.f32 %v388_v18 }
 0x4ec   :  { %v516_v19 = vpop.eup %515 }
 0x4ed   :  { %v400_v20 = vmul.f32 %v516_v19, %v388_v18  ;;  %vm406_vm7 = vweird.f32 %v516_v19 }
 0x4ee   :  { %vm407_vm9 = vmor %vm405_vm8, %vm406_vm7 }
 0x4ef   :  { %v401_v21 = vmul.f32 %v516_v19, %v400_v20 }
 0x4f1   :  { %v402_v22 = vmul.f32 0.5, %v401_v21 }
 0x4f3   :  { %v403_v23 = vsub.f32 1.5, %v402_v22 }
 0x4f5   :  { %v404_v25 = vmul.f32 %v516_v19, %v403_v23 }
 0x4f7   :  { %v408_v26 = vsel %vm407_vm9, %v516_v19, %v404_v25 }
 0x4f8   :  { %v410_v27 = vmul.f32 %v408_v26, %v336_v24 }
 0x4fa   :  { %430 = vperm.xlu2 %494, %v410_v27   ;;  %v412_v28 = vmul.f32 %v410_v27, %v352_v48 }
 0x4fc   :  { %417 = vrot.lane.b32.xlu0 %v412_v28, %s519_s14 }
 0x502   :  { %498 = vset.pattern.permute.xlu2 %v520_v30 }
 0x53e   :  { %v416_v31 = vpop.permute.xlu2 %415 }
 0x53f   :  { %v421_v33 = vsub.f32 %v335_v9, %v416_v31 }
 0x541   :  { %439 = vperm.xlu0 %497, %v421_v33  }
 0x554   :  { %v426_v37 = vpop.permute.xlu1 %425  ;;  %v431_v44 = vpop.permute.xlu2 %430 }
 0x555   :  { %v433_v39 = vmul.f32 %v426_v37, %v608_v29  ;;  %v435_v40 = vmul.f32 %v426_v37, %v616_v35  ;;  %v434_v45 = vmul.f32 %v431_v44, %v612_v32  ;;  %v436_v29 = vmul.f32 %v431_v44, %v620_v38 }
 0x56e   :  { %v418_v34 = vpop.permute.xlu0 %417 }
 0x56f   :  { %v422_v36 = vsub.f32 %v336_v24, %v418_v34 }
 0x571   :  { %444 = vperm.xlu2 %498, %v422_v36  }
 0x5b3   :  { %v440_v41 = vpop.permute.xlu0 %439 }
 0x5b4   :  { %v447_v42 = vadd.f32 %v440_v41, %v433_v39  ;;  %v449_v43 = vadd.f32 %v440_v41, %v435_v40 }
 0x5b6   :  { %451 = vst.msk [vmem:[%s662_s4] sm:$0xff] %vm231_vm2, %v447_v42 }
 0x5b7   :  { %453 = vst.msk [vmem:[%s662_s4 + $0x10] sm:$0xff] %vm231_vm2, %v449_v43 }
 0x5cb   :  { %v445_v46 = vpop.permute.xlu2 %444 }
 0x5cc   :  { %v448_v35 = vadd.f32 %v445_v46, %v434_v45  ;;  %v450_v47 = vadd.f32 %v445_v46, %v436_v29 }
 0x5ce   :  { %452 = vst.msk [vmem:[%s662_s4 + $0x8] sm:$0xff] %vm231_vm2, %v448_v35 }
 0x5cf   :  { %454 = vst.msk [vmem:[%s662_s4 + $0x18] sm:$0xff] %vm231_vm2, %v450_v47 }

</bundles_post_ra>
